<compile_context>
chip_gen: v5e
topology: v5e:2x2
jax: 0.10.0
libtpu: 0.0.40
codegen_flags: <defaults>
</compile_context>

<pallas_src>
import jax
import jax.numpy as jnp
from jax.experimental import pallas as pl
from jax.experimental.pallas import tpu as pltpu

_LANE = 128      # lane width
_SUBLANE = 8     # f32 sublane count


def _round_up(n: int, m: int) -> int:
    return (n + m - 1) // m * m


def _pad2(a, rows: int, cols: int):
    r, c = a.shape
    return jnp.pad(a, ((0, rows - r), (0, cols - c)))


def _make_kernel(num_modalities: int):
    """Builds the fused kernel for a fixed number of modalities."""
    M = num_modalities

    def kernel(*refs):
        # refs layout:
        #   x_0 .. x_{M-1}        modality inputs                 (Bt, D_i_pad)
        #   w_0 .. w_{M-1}        projection weights              (D_i_pad, F_pad)
        #   b_0 .. b_{M-1}        projection biases               (1, F_pad)
        #   wf_0 .. wf_{M-1}      fusion weight chunks            (F_pad, F_pad)
        #   b_fuse                fusion bias                     (1, F_pad)
        #   w_cls, b_cls          classifier                      (F_pad, C_pad), (1, C_pad)
        #   out                   logits                          (Bt, C_pad)
        xs = refs[0 * M:1 * M]
        ws = refs[1 * M:2 * M]
        bs = refs[2 * M:3 * M]
        wfs = refs[3 * M:4 * M]
        b_fuse, w_cls, b_cls, out_ref = refs[4 * M:]

        # fused = b_fuse + sum_i proj_i @ Wfuse_i   (split-K accumulate, no concat)
        fused = b_fuse[...].astype(jnp.float32)                      # (1, F_pad)
        for x, w, b, wf in zip(xs, ws, bs, wfs):
            p = jnp.dot(x[...], w[...],
                        preferred_element_type=jnp.float32) + b[...]  # (Bt, F_pad)
            fused = fused + jnp.dot(p, wf[...],
                                    preferred_element_type=jnp.float32)

        logits = jnp.dot(fused, w_cls[...],
                         preferred_element_type=jnp.float32) + b_cls[...]  # (Bt, C_pad)
        out_ref[...] = logits.astype(out_ref.dtype)

    return kernel


def multimodal_classifier(modalities, params, num_classes, *, block_b: int = 512):
    """Fused Pallas forward.

    modalities: list of (B, D_i) arrays.
    params: dict with 'proj_w' (list of (D_i, F)), 'proj_b' (list of (1, F)),
            'fuse_w' (M*F, F), 'fuse_b' (1, F), 'cls_w' (F, C), 'cls_b' (1, C).
    """
    M = len(modalities)
    B = modalities[0].shape[0]
    F = params["fuse_b"].shape[1]
    C = num_classes

    F_pad = _round_up(F, _LANE)
    C_pad = _round_up(C, _LANE)

    # Batch padding / tiling decision.
    if B <= block_b:
        B_pad = _round_up(max(B, _SUBLANE), _SUBLANE)
        tile_b = B_pad
        grid = None                      # single resident block, no grid overhead
    else:
        B_pad = _round_up(B, block_b)
        tile_b = block_b
        grid = (B_pad // block_b,)       # batch-tiled, "parallel"

    # Pad everything to lane/sublane-friendly shapes (zero padding is exact:
    # padded columns propagate as zeros and are sliced off at the end).
    xs, ws, bs = [], [], []
    for x, w, b in zip(modalities, params["proj_w"], params["proj_b"]):
        D = x.shape[1]
        D_pad = _round_up(D, _LANE)
        xs.append(_pad2(x, B_pad, D_pad))
        ws.append(_pad2(w, D_pad, F_pad))
        bs.append(_pad2(b, 1, F_pad))

    # Split fuse_w into M static (F, F) chunks -> (F_pad, F_pad), removing the
    # need for any lane-axis concatenate in the kernel.
    wfs = [_pad2(params["fuse_w"][i * F:(i + 1) * F, :], F_pad, F_pad)
           for i in range(M)]
    b_fuse = _pad2(params["fuse_b"], 1, F_pad)
    w_cls = _pad2(params["cls_w"], F_pad, C_pad)
    b_cls = _pad2(params["cls_b"], 1, C_pad)

    inputs = xs + ws + bs + wfs + [b_fuse, w_cls, b_cls]
    kernel = _make_kernel(M)
    out_shape = jax.ShapeDtypeStruct((B_pad, C_pad), jnp.float32)

    if grid is None:
        # Everything resident in VMEM; no grid -> no pipeline prologue/epilogue.
        out_pad = pl.pallas_call(kernel, out_shape=out_shape)(*inputs)
    else:
        def row_block(shape):
            # Tile over batch rows only; weights stay whole-array blocks.
            return pl.BlockSpec((tile_b, shape[1]), lambda i: (i, 0))

        def full_block(shape):
            return pl.BlockSpec(shape, lambda i: (0, 0))

        in_specs = ([row_block(x.shape) for x in xs]
                    + [full_block(a.shape)
                       for a in ws + bs + wfs + [b_fuse, w_cls, b_cls]])
        out_spec = pl.BlockSpec((tile_b, C_pad), lambda i: (i, 0))

        out_pad = pl.pallas_call(
            kernel,
            out_shape=out_shape,
            grid=grid,
            in_specs=in_specs,
            out_specs=out_spec,
            compiler_params=pltpu.CompilerParams(
                dimension_semantics=("parallel",),
            ),
        )(*inputs)

    # TODO(synk): for production sizes on v6e consider casting activations/weights
    # to bfloat16 in this wrapper (keep preferred_element_type=f32 in the dots).
    return out_pad[:B, :C]


def init_params(key, modality_dims, fusion_dim, num_classes):
    """Deterministic PyTorch-nn.Linear-style init (uniform(-1/sqrt(in), 1/sqrt(in)))."""
    params = {"proj_w": [], "proj_b": []}

    def linear(k, fan_in, fan_out):
        k_w, k_b = jax.random.split(k)
        bound = 1.0 / jnp.sqrt(fan_in)
        w = jax.random.uniform(k_w, (fan_in, fan_out), jnp.float32, -bound, bound)
        b = jax.random.uniform(k_b, (1, fan_out), jnp.float32, -bound, bound)
        return w, b

    keys = jax.random.split(key, len(modality_dims) + 2)
    for i, d in enumerate(modality_dims):
        w, b = linear(keys[i], d, fusion_dim)
        params["proj_w"].append(w)
        params["proj_b"].append(b)

    params["fuse_w"], params["fuse_b"] = linear(
        keys[len(modality_dims)], fusion_dim * len(modality_dims), fusion_dim
    )
    params["cls_w"], params["cls_b"] = linear(
        keys[len(modality_dims) + 1], fusion_dim, num_classes
    )
    return params


def reference_forward(modalities, params):
    """Pure-JAX reference matching the PyTorch module (fully linear, no activation)."""
    projected = [
        x @ w + b
        for x, w, b in zip(modalities, params["proj_w"], params["proj_b"])
    ]
    concatenated = jnp.concatenate(projected, axis=1)
    fused = concatenated @ params["fuse_w"] + params["fuse_b"]
    return fused @ params["cls_w"] + params["cls_b"]


if __name__ == "__main__":
    modality_dims = [16, 32, 24]   # e.g. audio / vision / text feature dims
    fusion_dim = 32
    num_classes = 8

    key = jax.random.PRNGKey(0)
    k_params, k_small, k_large = jax.random.split(key, 3)
    params = init_params(k_params, modality_dims, fusion_dim, num_classes)

    def make_modalities(k, batch):
        ks = jax.random.split(k, len(modality_dims))
        return [jax.random.normal(kk, (batch, d), jnp.float32)
                for kk, d in zip(ks, modality_dims)]

    # 1) Small batch: single resident block, no grid.
    mods_small = make_modalities(k_small, 4)
    out_small = jax.block_until_ready(
        multimodal_classifier(mods_small, params, num_classes))
    ref_small = reference_forward(mods_small, params)
    assert out_small.shape == (4, num_classes)
    assert jnp.allclose(out_small, ref_small, atol=1e-4, rtol=1e-4), \
        "small-batch mismatch vs JAX reference"

    # 2) Larger batch: exercises the batch-tiled "parallel" grid path.
    mods_large = make_modalities(k_large, 1000)
    out_large = jax.block_until_ready(
        multimodal_classifier(mods_large, params, num_classes, block_b=512))
    ref_large = reference_forward(mods_large, params)
    assert out_large.shape == (1000, num_classes)
    assert jnp.allclose(out_large, ref_large, atol=1e-4, rtol=1e-4), \
        "batch-tiled mismatch vs JAX reference"

    print("KERNEL_OK")
</pallas_src>

<mosaic_0001>
module attributes {stable_mosaic.version = 11 : i64} {
  func.func @kernel(%arg0: memref<8x128xf32, #tpu.memory_space<vmem>>, %arg1: memref<8x128xf32, #tpu.memory_space<vmem>>, %arg2: memref<8x128xf32, #tpu.memory_space<vmem>>, %arg3: memref<128x128xf32, #tpu.memory_space<vmem>>, %arg4: memref<128x128xf32, #tpu.memory_space<vmem>>, %arg5: memref<128x128xf32, #tpu.memory_space<vmem>>, %arg6: memref<1x128xf32, #tpu.memory_space<vmem>>, %arg7: memref<1x128xf32, #tpu.memory_space<vmem>>, %arg8: memref<1x128xf32, #tpu.memory_space<vmem>>, %arg9: memref<128x128xf32, #tpu.memory_space<vmem>>, %arg10: memref<128x128xf32, #tpu.memory_space<vmem>>, %arg11: memref<128x128xf32, #tpu.memory_space<vmem>>, %arg12: memref<1x128xf32, #tpu.memory_space<vmem>>, %arg13: memref<128x128xf32, #tpu.memory_space<vmem>>, %arg14: memref<1x128xf32, #tpu.memory_space<vmem>>, %arg15: memref<8x128xf32, #tpu.memory_space<vmem>>) attributes {dimension_semantics = [], scalar_prefetch = 0 : i64, scratch_operands = 0 : i64, tpu.core_type = #tpu.core_type<tc>} {
    %c0 = arith.constant 0 : index
    %c0_0 = arith.constant 0 : index
    %0 = vector.load %arg12[%c0, %c0_0] : memref<1x128xf32, #tpu.memory_space<vmem>>, vector<1x128xf32>
    %c0_1 = arith.constant 0 : index
    %c0_2 = arith.constant 0 : index
    %1 = vector.load %arg0[%c0_1, %c0_2] : memref<8x128xf32, #tpu.memory_space<vmem>>, vector<8x128xf32>
    %c0_3 = arith.constant 0 : index
    %c0_4 = arith.constant 0 : index
    %2 = vector.load %arg3[%c0_3, %c0_4] : memref<128x128xf32, #tpu.memory_space<vmem>>, vector<128x128xf32>
    %cst = arith.constant dense<0.000000e+00> : vector<8x128xf32>
    %3 = tpu.matmul %1, %2, %cst {dimension_numbers = #tpu.dot_dimension_numbers<[1], [0], [0], [1], [0, 0, 1, 1], [], []>} : vector<8x128xf32>, vector<128x128xf32>, vector<8x128xf32> -> vector<8x128xf32>
    %c0_5 = arith.constant 0 : index
    %c0_6 = arith.constant 0 : index
    %4 = vector.load %arg6[%c0_5, %c0_6] : memref<1x128xf32, #tpu.memory_space<vmem>>, vector<1x128xf32>
    %5 = vector.broadcast %4 : vector<1x128xf32> to vector<8x128xf32>
    %6 = arith.addf %3, %5 : vector<8x128xf32>
    %c0_7 = arith.constant 0 : index
    %c0_8 = arith.constant 0 : index
    %7 = vector.load %arg9[%c0_7, %c0_8] : memref<128x128xf32, #tpu.memory_space<vmem>>, vector<128x128xf32>
    %cst_9 = arith.constant dense<0.000000e+00> : vector<8x128xf32>
    %8 = tpu.matmul %6, %7, %cst_9 {dimension_numbers = #tpu.dot_dimension_numbers<[1], [0], [0], [1], [0, 0, 1, 1], [], []>} : vector<8x128xf32>, vector<128x128xf32>, vector<8x128xf32> -> vector<8x128xf32>
    %9 = vector.broadcast %0 : vector<1x128xf32> to vector<8x128xf32>
    %10 = arith.addf %9, %8 : vector<8x128xf32>
    %c0_10 = arith.constant 0 : index
    %c0_11 = arith.constant 0 : index
    %11 = vector.load %arg1[%c0_10, %c0_11] : memref<8x128xf32, #tpu.memory_space<vmem>>, vector<8x128xf32>
    %c0_12 = arith.constant 0 : index
    %c0_13 = arith.constant 0 : index
    %12 = vector.load %arg4[%c0_12, %c0_13] : memref<128x128xf32, #tpu.memory_space<vmem>>, vector<128x128xf32>
    %cst_14 = arith.constant dense<0.000000e+00> : vector<8x128xf32>
    %13 = tpu.matmul %11, %12, %cst_14 {dimension_numbers = #tpu.dot_dimension_numbers<[1], [0], [0], [1], [0, 0, 1, 1], [], []>} : vector<8x128xf32>, vector<128x128xf32>, vector<8x128xf32> -> vector<8x128xf32>
    %c0_15 = arith.constant 0 : index
    %c0_16 = arith.constant 0 : index
    %14 = vector.load %arg7[%c0_15, %c0_16] : memref<1x128xf32, #tpu.memory_space<vmem>>, vector<1x128xf32>
    %15 = vector.broadcast %14 : vector<1x128xf32> to vector<8x128xf32>
    %16 = arith.addf %13, %15 : vector<8x128xf32>
    %c0_17 = arith.constant 0 : index
    %c0_18 = arith.constant 0 : index
    %17 = vector.load %arg10[%c0_17, %c0_18] : memref<128x128xf32, #tpu.memory_space<vmem>>, vector<128x128xf32>
    %cst_19 = arith.constant dense<0.000000e+00> : vector<8x128xf32>
    %18 = tpu.matmul %16, %17, %cst_19 {dimension_numbers = #tpu.dot_dimension_numbers<[1], [0], [0], [1], [0, 0, 1, 1], [], []>} : vector<8x128xf32>, vector<128x128xf32>, vector<8x128xf32> -> vector<8x128xf32>
    %19 = arith.addf %10, %18 : vector<8x128xf32>
    %c0_20 = arith.constant 0 : index
    %c0_21 = arith.constant 0 : index
    %20 = vector.load %arg2[%c0_20, %c0_21] : memref<8x128xf32, #tpu.memory_space<vmem>>, vector<8x128xf32>
    %c0_22 = arith.constant 0 : index
    %c0_23 = arith.constant 0 : index
    %21 = vector.load %arg5[%c0_22, %c0_23] : memref<128x128xf32, #tpu.memory_space<vmem>>, vector<128x128xf32>
    %cst_24 = arith.constant dense<0.000000e+00> : vector<8x128xf32>
    %22 = tpu.matmul %20, %21, %cst_24 {dimension_numbers = #tpu.dot_dimension_numbers<[1], [0], [0], [1], [0, 0, 1, 1], [], []>} : vector<8x128xf32>, vector<128x128xf32>, vector<8x128xf32> -> vector<8x128xf32>
    %c0_25 = arith.constant 0 : index
    %c0_26 = arith.constant 0 : index
    %23 = vector.load %arg8[%c0_25, %c0_26] : memref<1x128xf32, #tpu.memory_space<vmem>>, vector<1x128xf32>
    %24 = vector.broadcast %23 : vector<1x128xf32> to vector<8x128xf32>
    %25 = arith.addf %22, %24 : vector<8x128xf32>
    %c0_27 = arith.constant 0 : index
    %c0_28 = arith.constant 0 : index
    %26 = vector.load %arg11[%c0_27, %c0_28] : memref<128x128xf32, #tpu.memory_space<vmem>>, vector<128x128xf32>
    %cst_29 = arith.constant dense<0.000000e+00> : vector<8x128xf32>
    %27 = tpu.matmul %25, %26, %cst_29 {dimension_numbers = #tpu.dot_dimension_numbers<[1], [0], [0], [1], [0, 0, 1, 1], [], []>} : vector<8x128xf32>, vector<128x128xf32>, vector<8x128xf32> -> vector<8x128xf32>
    %28 = arith.addf %19, %27 : vector<8x128xf32>
    %c0_30 = arith.constant 0 : index
    %c0_31 = arith.constant 0 : index
    %29 = vector.load %arg13[%c0_30, %c0_31] : memref<128x128xf32, #tpu.memory_space<vmem>>, vector<128x128xf32>
    %cst_32 = arith.constant dense<0.000000e+00> : vector<8x128xf32>
    %30 = tpu.matmul %28, %29, %cst_32 {dimension_numbers = #tpu.dot_dimension_numbers<[1], [0], [0], [1], [0, 0, 1, 1], [], []>} : vector<8x128xf32>, vector<128x128xf32>, vector<8x128xf32> -> vector<8x128xf32>
    %c0_33 = arith.constant 0 : index
    %c0_34 = arith.constant 0 : index
    %31 = vector.load %arg14[%c0_33, %c0_34] : memref<1x128xf32, #tpu.memory_space<vmem>>, vector<1x128xf32>
    %32 = vector.broadcast %31 : vector<1x128xf32> to vector<8x128xf32>
    %33 = arith.addf %30, %32 : vector<8x128xf32>
    %c0_35 = arith.constant 0 : index
    %c0_36 = arith.constant 0 : index
    %34 = vector.load %arg15[%c0_35, %c0_36] : memref<8x128xf32, #tpu.memory_space<vmem>>, vector<8x128xf32>
    tpu.vector_store %arg15[%c0_35, %c0_36], %33 {strides = array<i32>} : memref<8x128xf32, #tpu.memory_space<vmem>>, vector<8x128xf32>,
    return
  }
}

</mosaic_0001>

<bundles_post_ra>
// kernel: tpu_custom_call.1
= control target key start
LH: loop header
LB: loop body
LE: loop exit
PB: predicated region body
PF: predicated region fallthrough
CT: control target
= control target key end

     0   :  { %20 = vsyncpa [#allocation3], 0  ;;  %s960_s0 = inlined_call_operand.hbm [shape: f32[8,128], index: 0, kind: input, shape index: {}]   ;;  %s961_s1 = inlined_call_operand.hbm [shape: f32[8,128], index: 1, kind: input, shape index: {}]   ;;  %s962_s2 = inlined_call_operand.hbm [shape: f32[8,128], index: 2, kind: input, shape index: {}]   ;;  %s963_s3 = inlined_call_operand.hbm [shape: f32[128,128], index: 3, kind: input, shape index: {}]   ;;  %s964_s4 = inlined_call_operand.hbm [shape: f32[128,128], index: 4, kind: input, shape index: {}]   ;;  %s965_s5 = inlined_call_operand.hbm [shape: f32[128,128], index: 5, kind: input, shape index: {}]   ;;  %s966_s6 = inlined_call_operand.vmem [shape: f32[1,128], index: 6, kind: input, shape index: {}]   ;;  %s967_s7 = inlined_call_operand.vmem [shape: f32[1,128], index: 7, kind: input, shape index: {}]   ;;  %s968_s8 = inlined_call_operand.vmem [shape: f32[1,128], index: 8, kind: input, shape index: {}]   ;;  %s969_s9 = inlined_call_operand.hbm [shape: f32[128,128], index: 9, kind: input, shape index: {}]   ;;  %s970_s10 = inlined_call_operand.hbm [shape: f32[128,128], index: 10, kind: input, shape index: {}]   ;;  %s971_s11 = inlined_call_operand.hbm [shape: f32[128,128], index: 11, kind: input, shape index: {}]   ;;  %s972_s12 = inlined_call_operand.vmem [shape: f32[1,128], index: 12, kind: input, shape index: {}]   ;;  %s973_s13 = inlined_call_operand.hbm [shape: f32[128,128], index: 13, kind: input, shape index: {}]   ;;  %s974_s14 = inlined_call_operand.vmem [shape: f32[1,128], index: 14, kind: input, shape index: {}]   ;;  %s975_s15 = inlined_call_operand.hbm [shape: f32[8,128], index: 15, kind: output, shape index: {}]  }
   0x1   :  { %21 = vsyncpa [#allocation6], 0 }
   0x2   :  { %22 = vsyncpa [#allocation9], 0 }
   0x3   :  { %23 = vsyncpa [#allocation12], 0 }
   0x4   :  { %24 = vsyncpa [#allocation15], 0 }
   0x5   :  { %25 = vsyncpa [#allocation18], 0  ;;  %s43_s20 = sshll.u32 %s961_s1, 4  ;;  %s44_s20 = int_to_ptr.hbm [resolvable:$true] %s43_s20 }
   0x6   :  { %26 = vsyncpa [#allocation4], 0  ;;  %s798_s21 = smov [#allocation5]   ;;  %s64_s25 = sshll.u32 %s963_s3, 4  ;;  %s65_s25 = int_to_ptr.hbm [resolvable:$true] %s64_s25 }
   0x7   :  { %s45_s22 = sshll.u32 %s798_s21, 4  ;;  %s799_s26 = smov [#allocation8]   ;;  %s46_s22 = int_to_ptr.vmem [resolvable:$true] %s45_s22 }
   0x8   :  { %48 = dma.hbm_to_vmem [thread:$0]  %s44_s20, 128, %s46_s22, [#allocation6]  }
   0x9   :  { %s66_s27 = sshll.u32 %s799_s26, 4  ;;  %s800_s28 = smov 128   ;;  %s67_s27 = int_to_ptr.vmem [resolvable:$true] %s66_s27 }
   0xa   :  { %s801_s29 = smov 8   ;;  %s90_s16 = sshll.u32 %s965_s5, 4  ;;  %s91_s16 = int_to_ptr.hbm [resolvable:$true] %s90_s16 }
   0xb   :  { %72 = dma.hbm_to_vmem [thread:$0]  %s65_s25, 2048, %s67_s27, [#allocation9], %s800_s28, %s800_s28, %s801_s29  }
   0xc   :  { %s802_s17 = smov [#allocation11]   ;;  %s122_s20 = sshll.u32 %s970_s10, 4  ;;  %s123_s20 = int_to_ptr.hbm [resolvable:$true] %s122_s20 }
   0xd   :  { %s92_s18 = sshll.u32 %s802_s17, 4  ;;  %s803_s21 = smov [#allocation14]   ;;  %s93_s18 = int_to_ptr.vmem [resolvable:$true] %s92_s18 }
   0xe   :  { %98 = dma.hbm_to_vmem [thread:$0]  %s91_s16, 2048, %s93_s18, [#allocation12], %s800_s28, %s800_s28, %s801_s29  }
   0xf   :  { %s124_s22 = sshll.u32 %s803_s21, 4  ;;  %s32_s25 = sshll.u32 %s960_s0, 4  ;;  %s125_s22 = int_to_ptr.vmem [resolvable:$true] %s124_s22  ;;  %s33_s25 = int_to_ptr.hbm [resolvable:$true] %s32_s25 }
  0x10   :  { %130 = dma.hbm_to_vmem [thread:$0]  %s123_s20, 2048, %s125_s22, [#allocation15], %s800_s28, %s800_s28, %s801_s29  }
  0x11   :  { %s54_s10 = sshll.u32 %s962_s2, 4  ;;  %s804_s27 = smov [#allocation2]   ;;  %s55_s10 = int_to_ptr.hbm [resolvable:$true] %s54_s10 }
  0x12   :  { %s34_s1 = sshll.u32 %s804_s27, 4  ;;  %s805_s30 = smov [#allocation7]   ;;  %s35_s1 = int_to_ptr.vmem [resolvable:$true] %s34_s1 }
  0x13   :  { %37 = dma.hbm_to_vmem [thread:$0]  %s33_s25, 128, %s35_s1, [#allocation3]  }
  0x14   :  { %s56_s16 = sshll.u32 %s805_s30, 4  ;;  %s77_s0 = sshll.u32 %s964_s4, 4  ;;  %s57_s16 = int_to_ptr.vmem [resolvable:$true] %s56_s16  ;;  %s78_s0 = int_to_ptr.hbm [resolvable:$true] %s77_s0 }
  0x15   :  { %59 = dma.hbm_to_vmem [thread:$0]  %s55_s10, 128, %s57_s16, [#allocation6]  }
  0x16   :  { %s109_s20 = sshll.u32 %s969_s9, 4  ;;  %s806_s21 = smov [#allocation10]   ;;  %s110_s20 = int_to_ptr.hbm [resolvable:$true] %s109_s20 }
  0x17   :  { %s79_s2 = sshll.u32 %s806_s21, 4  ;;  %s807_s22 = smov [#allocation13]   ;;  %s80_s2 = int_to_ptr.vmem [resolvable:$true] %s79_s2 }
  0x18   :  { %85 = dma.hbm_to_vmem [thread:$0]  %s78_s0, 2048, %s80_s2, [#allocation9], %s800_s28, %s800_s28, %s801_s29  }
  0x19   :  { %s111_s23 = sshll.u32 %s807_s22, 4  ;;  %s135_s4 = sshll.u32 %s971_s11, 4  ;;  %s112_s23 = int_to_ptr.vmem [resolvable:$true] %s111_s23  ;;  %s136_s4 = int_to_ptr.hbm [resolvable:$true] %s135_s4 }
  0x1a   :  { %117 = dma.hbm_to_vmem [thread:$0]  %s110_s20, 2048, %s112_s23, [#allocation12], %s800_s28, %s800_s28, %s801_s29  }
  0x1b   :  { %s150_s26 = sshll.u32 %s973_s13, 4  ;;  %s808_s10 = smov [#allocation16]   ;;  %s151_s26 = int_to_ptr.hbm [resolvable:$true] %s150_s26 }
  0x1c   :  { %s137_s27 = sshll.u32 %s808_s10, 4  ;;  %s809_s1 = smov [#allocation17]   ;;  %s138_s27 = int_to_ptr.vmem [resolvable:$true] %s137_s27 }
  0x1d   :  { %143 = dma.hbm_to_vmem [thread:$0]  %s136_s4, 2048, %s138_s27, [#allocation15], %s800_s28, %s800_s28, %s801_s29  }
  0x1e   :  { %s152_s11 = sshll.u32 %s809_s1, 4  ;;  %s153_s11 = int_to_ptr.vmem [resolvable:$true] %s152_s11 }
  0x1f   :  { %158 = dma.hbm_to_vmem [thread:$0]  %s151_s26, 2048, %s153_s11, [#allocation18], %s800_s28, %s800_s28, %s801_s29  }
  0x20   :  { %784 = dma.done.wait [#allocation3], 128  }
  0x21   :  { %785 = vsyncadd [#allocation3], 4294967168 }
  0x22   :  { %786 = dma.done.wait [#allocation6], 256  }
  0x23   :  { %787 = vsyncadd [#allocation6], 4294967040 }
  0x24   :  { %788 = dma.done.wait [#allocation9], 4096  }
  0x25   :  { %789 = vsyncadd [#allocation9], 4294963200 }
  0x26   :  { %790 = dma.done.wait [#allocation12], 4096  }
  0x27   :  { %791 = vsyncadd [#allocation12], 4294963200 }
  0x28   :  { %792 = dma.done.wait [#allocation15], 4096  }
  0x29   :  { %793 = vsyncadd [#allocation15], 4294963200 }
  0x2a   :  { %794 = dma.done.wait [#allocation18], 2048  }
  0x2b   :  { %795 = vsyncadd [#allocation18], 4294965248  ;;  %v218_v0 = vld [vmem:[#allocation8 + $0x78] sm:$0xff]  ;;  %v217_v1 = vld [vmem:[#allocation8 + $0x70] sm:$0xff]  ;;  %s810_s0 = smov [#allocation19]   ;;  %s487_s21 = sshll.u32 %s975_s15, 4  ;;  %s488_s21 = int_to_ptr.hbm [resolvable:$true] %s487_s21 }
  0x2c   :  { %223 = vmatpush.msra.mxu0 %v218_v0  ;;  %v216_v2 = vld [vmem:[#allocation8 + $0x68] sm:$0xff]  ;;  %v299_v3 = vld [vmem:[#allocation10 + $0x78] sm:$0xff]  ;;  %v298_v4 = vld [vmem:[#allocation10 + $0x70] sm:$0xff]  ;;  %s485_s3 = sshll.u32 %s810_s0, 4  ;;  %s486_s3 = int_to_ptr.vmem [resolvable:$true] %s485_s3 }
  0x2d   :  { %304 = vmatpush.msra.mxu2 %v299_v3  ;;  %v215_v5 = vld [vmem:[#allocation8 + $0x60] sm:$0xff]  ;;  %v297_v6 = vld [vmem:[#allocation10 + $0x68] sm:$0xff]  ;;  %v214_v7 = vld [vmem:[#allocation8 + $0x58] sm:$0xff] }
  0x2e   :  { %224 = vmatpush.msra.mxu0 %v217_v1  ;;  %v296_v8 = vld [vmem:[#allocation10 + $0x60] sm:$0xff]  ;;  %v213_v9 = vld [vmem:[#allocation8 + $0x50] sm:$0xff]  ;;  %v295_v10 = vld [vmem:[#allocation10 + $0x58] sm:$0xff] }
  0x2f   :  { %305 = vmatpush.msra.mxu2 %v298_v4  ;;  %v212_v11 = vld [vmem:[#allocation8 + $0x48] sm:$0xff]  ;;  %v294_v12 = vld [vmem:[#allocation10 + $0x50] sm:$0xff]  ;;  %v211_v13 = vld [vmem:[#allocation8 + $0x40] sm:$0xff] }
  0x30   :  { %225 = vmatpush.msra.mxu0 %v216_v2  ;;  %v293_v14 = vld [vmem:[#allocation10 + $0x48] sm:$0xff]  ;;  %v210_v15 = vld [vmem:[#allocation8 + $0x38] sm:$0xff]  ;;  %v292_v16 = vld [vmem:[#allocation10 + $0x40] sm:$0xff] }
  0x31   :  { %306 = vmatpush.msra.mxu2 %v297_v6  ;;  %v209_v17 = vld [vmem:[#allocation8 + $0x30] sm:$0xff]  ;;  %v291_v18 = vld [vmem:[#allocation10 + $0x38] sm:$0xff]  ;;  %v208_v19 = vld [vmem:[#allocation8 + $0x28] sm:$0xff] }
  0x32   :  { %226 = vmatpush.msra.mxu0 %v215_v5  ;;  %v290_v20 = vld [vmem:[#allocation10 + $0x30] sm:$0xff]  ;;  %v207_v21 = vld [vmem:[#allocation8 + $0x20] sm:$0xff]  ;;  %v289_v22 = vld [vmem:[#allocation10 + $0x28] sm:$0xff] }
  0x33   :  { %307 = vmatpush.msra.mxu2 %v296_v8  ;;  %v206_v23 = vld [vmem:[#allocation8 + $0x18] sm:$0xff]  ;;  %v288_v24 = vld [vmem:[#allocation10 + $0x20] sm:$0xff]  ;;  %v205_v25 = vld [vmem:[#allocation8 + $0x10] sm:$0xff] }
  0x34   :  { %227 = vmatpush.msra.mxu0 %v214_v7  ;;  %v287_v26 = vld [vmem:[#allocation10 + $0x18] sm:$0xff]  ;;  %v204_v27 = vld [vmem:[#allocation8 + $0x8] sm:$0xff]  ;;  %v286_v28 = vld [vmem:[#allocation10 + $0x10] sm:$0xff] }
  0x35   :  { %308 = vmatpush.msra.mxu2 %v295_v10  ;;  %v203_v29 = vld [vmem:[#allocation8] sm:$0xff]  ;;  %v285_v30 = vld [vmem:[#allocation10 + $0x8] sm:$0xff]  ;;  %v377_v31 = vld [vmem:[#allocation11 + $0x78] sm:$0xff] }
  0x36   :  { %228 = vmatpush.msra.mxu0 %v213_v9  ;;  %v284_v32 = vld [vmem:[#allocation10] sm:$0xff]  ;;  %v202_v33 = vld [vmem:[#allocation2] sm:$0xff]  ;;  %v376_v34 = vld [vmem:[#allocation11 + $0x70] sm:$0xff] }
  0x37   :  { %309 = vmatpush.msra.mxu2 %v294_v12  ;;  %v283_v35 = vld [vmem:[#allocation5] sm:$0xff]  ;;  %v258_v36 = vld [vmem:[#allocation13 + $0x78] sm:$0xff]  ;;  %v375_v38 = vld [vmem:[#allocation11 + $0x68] sm:$0xff] }
  0x38   :  { %229 = vmatpush.msra.mxu0 %v212_v11  ;;  %259 = vmatpush.msra.mxu1 %v258_v36  ;;  %v257_v37 = vld [vmem:[#allocation13 + $0x70] sm:$0xff]  ;;  %v256_v39 = vld [vmem:[#allocation13 + $0x68] sm:$0xff]  ;;  %v339_v40 = vld [vmem:[#allocation14 + $0x78] sm:$0xff] }
  0x39   :  { %310 = vmatpush.msra.mxu2 %v293_v14  ;;  %v374_v41 = vld [vmem:[#allocation11 + $0x60] sm:$0xff]  ;;  %340 = vmatpush.msra.mxu3 %v339_v40  ;;  %v338_v42 = vld [vmem:[#allocation14 + $0x70] sm:$0xff]  ;;  %v337_v44 = vld [vmem:[#allocation14 + $0x68] sm:$0xff] }
  0x3a   :  { %230 = vmatpush.msra.mxu0 %v211_v13  ;;  %260 = vmatpush.msra.mxu1 %v257_v37  ;;  %v255_v43 = vld [vmem:[#allocation13 + $0x60] sm:$0xff]  ;;  %v373_v45 = vld [vmem:[#allocation11 + $0x58] sm:$0xff]  ;;  %v372_v48 = vld [vmem:[#allocation11 + $0x50] sm:$0xff] }
  0x3b   :  { %311 = vmatpush.msra.mxu2 %v292_v16  ;;  %341 = vmatpush.msra.mxu3 %v338_v42  ;;  %v254_v46 = vld [vmem:[#allocation13 + $0x58] sm:$0xff]  ;;  %v336_v47 = vld [vmem:[#allocation14 + $0x60] sm:$0xff]  ;;  %v253_v49 = vld [vmem:[#allocation13 + $0x50] sm:$0xff] }
  0x3c   :  { %231 = vmatpush.msra.mxu0 %v210_v15  ;;  %261 = vmatpush.msra.mxu1 %v256_v39  ;;  %v335_v50 = vld [vmem:[#allocation14 + $0x58] sm:$0xff]  ;;  %v371_v51 = vld [vmem:[#allocation11 + $0x48] sm:$0xff]  ;;  %v334_v53 = vld [vmem:[#allocation14 + $0x50] sm:$0xff] }
  0x3d   :  { %312 = vmatpush.msra.mxu2 %v291_v18  ;;  %342 = vmatpush.msra.mxu3 %v337_v44  ;;  %v252_v52 = vld [vmem:[#allocation13 + $0x48] sm:$0xff]  ;;  %v370_v54 = vld [vmem:[#allocation11 + $0x40] sm:$0xff]  ;;  %v369_v57 = vld [vmem:[#allocation11 + $0x38] sm:$0xff] }
  0x3e   :  { %232 = vmatpush.msra.mxu0 %v209_v17  ;;  %262 = vmatpush.msra.mxu1 %v255_v43  ;;  %v251_v55 = vld [vmem:[#allocation13 + $0x40] sm:$0xff]  ;;  %v333_v56 = vld [vmem:[#allocation14 + $0x48] sm:$0xff]  ;;  %v250_v58 = vld [vmem:[#allocation13 + $0x38] sm:$0xff] }
  0x3f   :  { %313 = vmatpush.msra.mxu2 %v290_v20  ;;  %343 = vmatpush.msra.mxu3 %v336_v47  ;;  %v332_v59 = vld [vmem:[#allocation14 + $0x40] sm:$0xff]  ;;  %v368_v60 = vld [vmem:[#allocation11 + $0x30] sm:$0xff]  ;;  %v331_v62 = vld [vmem:[#allocation14 + $0x38] sm:$0xff] }
  0x40   :  { %233 = vmatpush.msra.mxu0 %v208_v19  ;;  %263 = vmatpush.msra.mxu1 %v254_v46  ;;  %v249_v61 = vld [vmem:[#allocation13 + $0x30] sm:$0xff]  ;;  %v367_v63 = vld [vmem:[#allocation11 + $0x28] sm:$0xff]  ;;  %v366_v2 = vld [vmem:[#allocation11 + $0x20] sm:$0xff] }
  0x41   :  { %314 = vmatpush.msra.mxu2 %v289_v22  ;;  %344 = vmatpush.msra.mxu3 %v335_v50  ;;  %v248_v0 = vld [vmem:[#allocation13 + $0x28] sm:$0xff]  ;;  %v330_v1 = vld [vmem:[#allocation14 + $0x30] sm:$0xff]  ;;  %v247_v3 = vld [vmem:[#allocation13 + $0x20] sm:$0xff] }
  0x42   :  { %234 = vmatpush.msra.mxu0 %v207_v21  ;;  %264 = vmatpush.msra.mxu1 %v253_v49  ;;  %v329_v4 = vld [vmem:[#allocation14 + $0x28] sm:$0xff]  ;;  %v365_v5 = vld [vmem:[#allocation11 + $0x18] sm:$0xff]  ;;  %v328_v7 = vld [vmem:[#allocation14 + $0x20] sm:$0xff] }
  0x43   :  { %315 = vmatpush.msra.mxu2 %v288_v24  ;;  %345 = vmatpush.msra.mxu3 %v334_v53  ;;  %v246_v6 = vld [vmem:[#allocation13 + $0x18] sm:$0xff]  ;;  %v364_v8 = vld [vmem:[#allocation11 + $0x10] sm:$0xff]  ;;  %v363_v11 = vld [vmem:[#allocation11 + $0x8] sm:$0xff] }
  0x44   :  { %235 = vmatpush.msra.mxu0 %v206_v23  ;;  %265 = vmatpush.msra.mxu1 %v252_v52  ;;  %v245_v9 = vld [vmem:[#allocation13 + $0x10] sm:$0xff]  ;;  %v327_v10 = vld [vmem:[#allocation14 + $0x18] sm:$0xff]  ;;  %v244_v12 = vld [vmem:[#allocation13 + $0x8] sm:$0xff] }
  0x45   :  { %316 = vmatpush.msra.mxu2 %v287_v26  ;;  %346 = vmatpush.msra.mxu3 %v333_v56  ;;  %v326_v13 = vld [vmem:[#allocation14 + $0x10] sm:$0xff]  ;;  %v362_v14 = vld [vmem:[#allocation11] sm:$0xff]  ;;  %v361_v15 = vld [vmem:[#allocation7] sm:$0xff] }
  0x46   :  { %236 = vmatpush.msra.mxu0 %v205_v25  ;;  %266 = vmatpush.msra.mxu1 %v251_v55  ;;  %v243_v16 = vld [vmem:[#allocation13] sm:$0xff]  ;;  %v417_v17 = vld [vmem:[#allocation16 + $0x78] sm:$0xff]  ;;  %v416_v18 = vld [vmem:[#allocation16 + $0x70] sm:$0xff] }
  0x47   :  { %317 = vmatpush.msra.mxu2 %v286_v28  ;;  %347 = vmatpush.msra.mxu3 %v332_v59  ;;  %v415_v19 = vld [vmem:[#allocation16 + $0x68] sm:$0xff]  ;;  %v414_v20 = vld [vmem:[#allocation16 + $0x60] sm:$0xff]  ;;  %v413_v21 = vld [vmem:[#allocation16 + $0x58] sm:$0xff] }
  0x48   :  { %237 = vmatpush.msra.mxu0 %v204_v27  ;;  %267 = vmatpush.msra.mxu1 %v250_v58  ;;  %v412_v22 = vld [vmem:[#allocation16 + $0x50] sm:$0xff]  ;;  %v411_v23 = vld [vmem:[#allocation16 + $0x48] sm:$0xff]  ;;  %v410_v24 = vld [vmem:[#allocation16 + $0x40] sm:$0xff] }
  0x49   :  { %318 = vmatpush.msra.mxu2 %v285_v30  ;;  %348 = vmatpush.msra.mxu3 %v331_v62  ;;  %v325_v25 = vld [vmem:[#allocation14 + $0x8] sm:$0xff]  ;;  %v409_v26 = vld [vmem:[#allocation16 + $0x38] sm:$0xff]  ;;  %v324_v27 = vld [vmem:[#allocation14] sm:$0xff] }
  0x4a   :  { %238 = vmatpush.msra.mxu0 %v203_v29  ;;  %268 = vmatpush.msra.mxu1 %v249_v61  ;;  %v408_v28 = vld [vmem:[#allocation16 + $0x30] sm:$0xff]  ;;  %v407_v29 = vld [vmem:[#allocation16 + $0x28] sm:$0xff]  ;;  %v406_v30 = vld [vmem:[#allocation16 + $0x20] sm:$0xff] }
  0x4b   :  { %319 = vmatpush.msra.mxu2 %v284_v32  ;;  %239 = vmatmul.f32.vlgmr.msra.gmra.mxu0 %v202_v33  ;;  %v404_v32 = vld [vmem:[#allocation16 + $0x10] sm:$0xff]  ;;  %v516_v33 = vld [vmem:[%s966_s6] ss:$0 sm:$0xff]  ;;  %v451_v42 = vld [vmem:[#allocation17 + $0x60] sm:$0xff] }
  0x4c   :  { %382 = vmatpush.msrb.mxu0 %v377_v31  ;;  %320 = vmatmul.f32.vlgmr.msra.gmra.mxu2 %v283_v35  ;;  %v405_v31 = vld [vmem:[#allocation16 + $0x18] sm:$0xff]  ;;  %v402_v35 = vld [vmem:[#allocation16] sm:$0xff]  ;;  %v453_v39 = vld [vmem:[#allocation17 + $0x70] sm:$0xff] }
  0x4d   :  { %269 = vmatpush.msra.mxu1 %v248_v0  ;;  %349 = vmatpush.msra.mxu3 %v330_v1  ;;  %v452_v40 = vld [vmem:[#allocation17 + $0x68] sm:$0xff]  ;;  %v450_v44 = vld [vmem:[#allocation17 + $0x58] sm:$0xff]  ;;  %v449_v46 = vld [vmem:[#allocation17 + $0x50] sm:$0xff] }
  0x4e   :  { %383 = vmatpush.msrb.mxu0 %v376_v34  ;;  %v403_v34 = vld [vmem:[#allocation16 + $0x8] sm:$0xff]  ;;  %v446_v49 = vld [vmem:[#allocation17 + $0x38] sm:$0xff]  ;;  %v445_v50 = vld [vmem:[#allocation17 + $0x30] sm:$0xff] }
  0x4f   :  { %270 = vmatpush.msra.mxu1 %v247_v3  ;;  %350 = vmatpush.msra.mxu3 %v329_v4  ;;  %v448_v47 = vld [vmem:[#allocation17 + $0x48] sm:$0xff]  ;;  %v443_v55 = vld [vmem:[#allocation17 + $0x20] sm:$0xff]  ;;  %v442_v56 = vld [vmem:[#allocation17 + $0x18] sm:$0xff] }
  0x50   :  { %384 = vmatpush.msrb.mxu0 %v375_v38  ;;  %v454_v38 = vld [vmem:[#allocation17 + $0x78] sm:$0xff]  ;;  %v440_v58 = vld [vmem:[#allocation17 + $0x8] sm:$0xff]  ;;  %v439_v59 = vld [vmem:[#allocation17] sm:$0xff] }
  0x51   :  { %271 = vmatpush.msra.mxu1 %v246_v6  ;;  %351 = vmatpush.msra.mxu3 %v328_v7  ;;  %v518_v61 = vld [vmem:[%s972_s12] ss:$0 sm:$0xff] }
  0x52   :  { %385 = vmatpush.msrb.mxu0 %v374_v41  ;;  %459 = vmatpush.msrb.mxu2 %v454_v38  ;;  %v515_v41 = vld [vmem:[%s967_s7] ss:$0 sm:$0xff] }
  0x53   :  { %272 = vmatpush.msra.mxu1 %v245_v9  ;;  %352 = vmatpush.msra.mxu3 %v327_v10  ;;  %v519_v3 = vld [vmem:[%s974_s14] ss:$0 sm:$0xff] }
  0x54   :  { %386 = vmatpush.msrb.mxu0 %v373_v45  ;;  %460 = vmatpush.msrb.mxu2 %v453_v39 }
  0x55   :  { %273 = vmatpush.msra.mxu1 %v244_v12  ;;  %353 = vmatpush.msra.mxu3 %v326_v13 }
  0x56   :  { %387 = vmatpush.msrb.mxu0 %v372_v48  ;;  %461 = vmatpush.msrb.mxu2 %v452_v40  ;;  %v447_v48 = vld [vmem:[#allocation17 + $0x40] sm:$0xff] }
  0x57   :  { %274 = vmatpush.msra.mxu1 %v243_v16  ;;  %354 = vmatpush.msra.mxu3 %v325_v25 }
  0x58   :  { %388 = vmatpush.msrb.mxu0 %v371_v51  ;;  %462 = vmatpush.msrb.mxu2 %v451_v42  ;;  %v517_v51 = vld [vmem:[%s968_s8] ss:$0 sm:$0xff] }
  0x59   :  { %418 = vmatpush.msrb.mxu1 %v417_v17  ;;  %355 = vmatpush.msra.mxu3 %v324_v27 }
  0x5a   :  { %389 = vmatpush.msrb.mxu0 %v370_v54  ;;  %463 = vmatpush.msrb.mxu2 %v450_v44  ;;  %v444_v54 = vld [vmem:[#allocation17 + $0x28] sm:$0xff] }
  0x5b   :  { %419 = vmatpush.msrb.mxu1 %v416_v18 }
  0x5c   :  { %390 = vmatpush.msrb.mxu0 %v369_v57  ;;  %464 = vmatpush.msrb.mxu2 %v449_v46  ;;  %v441_v57 = vld [vmem:[#allocation17 + $0x10] sm:$0xff] }
  0x5d   :  { %420 = vmatpush.msrb.mxu1 %v415_v19 }
  0x5e   :  { %391 = vmatpush.msrb.mxu0 %v368_v60  ;;  %465 = vmatpush.msrb.mxu2 %v448_v47 }
  0x5f   :  { %421 = vmatpush.msrb.mxu1 %v414_v20 }
  0x60   :  { %392 = vmatpush.msrb.mxu0 %v367_v63  ;;  %466 = vmatpush.msrb.mxu2 %v447_v48 }
  0x61   :  { %422 = vmatpush.msrb.mxu1 %v413_v21 }
  0x62   :  { %393 = vmatpush.msrb.mxu0 %v366_v2  ;;  %467 = vmatpush.msrb.mxu2 %v446_v49 }
  0x63   :  { %423 = vmatpush.msrb.mxu1 %v412_v22 }
  0x64   :  { %394 = vmatpush.msrb.mxu0 %v365_v5  ;;  %468 = vmatpush.msrb.mxu2 %v445_v50 }
  0x65   :  { %424 = vmatpush.msrb.mxu1 %v411_v23 }
  0x66   :  { %395 = vmatpush.msrb.mxu0 %v364_v8  ;;  %469 = vmatpush.msrb.mxu2 %v444_v54 }
  0x67   :  { %425 = vmatpush.msrb.mxu1 %v410_v24 }
  0x68   :  { %396 = vmatpush.msrb.mxu0 %v363_v11  ;;  %470 = vmatpush.msrb.mxu2 %v443_v55 }
  0x69   :  { %426 = vmatpush.msrb.mxu1 %v409_v26 }
  0x6a   :  { %397 = vmatpush.msrb.mxu0 %v362_v14  ;;  %471 = vmatpush.msrb.mxu2 %v442_v56 }
  0x6b   :  { %398 = vmatmul.f32.vlgmr.msrb.gmra.mxu0 %v361_v15  ;;  %427 = vmatpush.msrb.mxu1 %v408_v28 }
  0x6c   :  { %472 = vmatpush.msrb.mxu2 %v441_v57 }
  0x6d   :  { %428 = vmatpush.msrb.mxu1 %v407_v29 }
  0x6e   :  { %473 = vmatpush.msrb.mxu2 %v440_v58 }
  0x6f   :  { %429 = vmatpush.msrb.mxu1 %v406_v30 }
  0x70   :  { %474 = vmatpush.msrb.mxu2 %v439_v59 }
  0x71   :  { %430 = vmatpush.msrb.mxu1 %v405_v31 }
  0x73   :  { %431 = vmatpush.msrb.mxu1 %v404_v32 }
  0x75   :  { %432 = vmatpush.msrb.mxu1 %v403_v34 }
  0x77   :  { %433 = vmatpush.msrb.mxu1 %v402_v35 }
  0xc8   :  { %v240_v36 = vpop.f32.mrf.mxu0 }
  0xc9   :  { %v241_v37 = vadd.f32 %v516_v33, %v240_v36 }
  0xcb   :  { %275 = vmatmul.f32.vlgmr.msra.gmra.mxu1 %v241_v37 }
  0xcf   :  { %v321_v43 = vpop.f32.mrf.mxu2 }
  0xd0   :  { %v322_v45 = vadd.f32 %v515_v41, %v321_v43 }
  0xd2   :  { %356 = vmatmul.f32.vlgmr.msra.gmra.mxu3 %v322_v45 }
  0xe8   :  { %v399_v52 = vpop.f32.mrf.mxu0 }
  0xe9   :  { %v400_v53 = vadd.f32 %v517_v51, %v399_v52 }
  0xeb   :  { %434 = vmatmul.f32.vlgmr.msrb.gmra.mxu1 %v400_v53 }
 0x148   :  { %v276_v60 = vpop.f32.mrf.mxu1 }
 0x149   :  { %v282_v62 = vadd.f32 %v518_v61, %v276_v60 }
 0x155   :  { %v357_v63 = vpop.f32.mrf.mxu3 }
 0x156   :  { %v360_v0 = vadd.f32 %v357_v63, %v282_v62 }
 0x168   :  { %v435_v1 = vpop.f32.mrf.mxu1 }
 0x169   :  { %v438_v2 = vadd.f32 %v435_v1, %v360_v0 }
 0x16b   :  { %475 = vmatmul.f32.vlgmr.msrb.gmra.mxu2 %v438_v2 }
 0x1ee   :  { %v476_v4 = vpop.f32.mrf.mxu2 }
 0x1ef   :  { %v477_v5 = vadd.f32 %v519_v3, %v476_v4 }
 0x1f1   :  { %479 = vst [vmem:[#allocation19] sm:$0xff] %v477_v5 }
 0x1f2   :  { %490 = dma.vmem_to_hbm [thread:$0]  %s486_s3, 128, %s488_s21, [#allocation4]  }
 0x1f3   :  { %796 = dma.done.wait [#allocation4], 128  }
 0x1f4   :  { %797 = vsyncadd [#allocation4], 4294967168 }
 0x1f5   :  { %495 = vsyncpa [#allocation3], 1 }
 0x1f6   :  { %496 = vsyncpa [#allocation6], 1 }
 0x1f7   :  { %497 = vsyncpa [#allocation9], 1 }
 0x1f8   :  { %498 = vsyncpa [#allocation12], 1 }
 0x1f9   :  { %499 = vsyncpa [#allocation15], 1 }
 0x1fa   :  { %500 = vsyncpa [#allocation18], 1 }
 0x1fb   :  { %501 = vsyncpa [#allocation4], 1 }

</bundles_post_ra>
